<compile_context>
chip_gen: v6e
topology: v6e:2x2x1
jax: 0.10.0
libtpu: 0.0.40
codegen_flags: <defaults>
</compile_context>

<pallas_src>
import functools

import jax
import jax.numpy as jnp
from jax import lax
from jax.experimental import pallas as pl
from jax.experimental.pallas import tpu as pltpu


def _round_up(x, m):
    return ((x + m - 1) // m) * m


def _bce_sum_kernel(hp_ref, ht_ref, a_ref, out_ref, *,
                    v_true, tv, tc, mask_rows, mask_cols, bce_dtype):
    """Per (row-block, col-block) tile: sum of BCE-with-logits over the tile.

    hp_ref : (TV, d)  bf16   row block of H_proj = H @ W_r
    ht_ref : (d, TC)  bf16   column block of H^T
    a_ref  : (TV, TC) int8   binary adjacency tile
    out_ref: (1, 8, 128) f32 per-row-block partial sum (resident across the
                             column grid axis; all lanes hold the same value)
    """
    i = pl.program_id(0)
    j = pl.program_id(1)

    @pl.when(j == 0)
    def _init():
        out_ref[...] = jnp.zeros_like(out_ref)

    # (TV, d) x (d, TC) on the MXU, f32 accumulation.
    z = jnp.dot(hp_ref[...], ht_ref[...], preferred_element_type=jnp.float32)

    zc = z.astype(bce_dtype)
    # A is {0,1}: the A*z term is a select, not a multiply.
    az = jnp.where(a_ref[...] != 0, zc, jnp.zeros_like(zc))
    # Numerically stable BCE(sigmoid(z), A) = max(z,0) - A*z + log1p(exp(-|z|)).
    bce = (jnp.maximum(zc, 0.0) - az
           + jnp.log1p(jnp.exp(-jnp.abs(zc)))).astype(jnp.float32)

    if mask_rows or mask_cols:
        keep = None
        if mask_rows:
            rows = i * tv + lax.broadcasted_iota(jnp.int32, (tv, tc), 0)
            keep = rows < v_true
        if mask_cols:
            cols = j * tc + lax.broadcasted_iota(jnp.int32, (tv, tc), 1)
            keep_c = cols < v_true
            keep = keep_c if keep is None else jnp.logical_and(keep, keep_c)
        bce = jnp.where(keep, bce, 0.0)

    # Scalar block sum, broadcast-accumulated into the resident output block.
    out_ref[...] += jnp.sum(bce)


def llpl_loss(H, A, landmark_indices, L, W_r, gamma, *,
              block_rows=512, block_cols=1024,
              bce_dtype=jnp.float32,
              vmem_limit_bytes=48 * 1024 * 1024):
    """Pallas implementation of LLPL.forward(H, A, landmark_indices).

    A is assumed to be a binary {0,1} adjacency matrix (as in the module spec).
    bce_dtype=jnp.bfloat16 is recommended on v6e/v7x; keep f32 on v5e.
    """
    V, d = H.shape
    H = H.astype(jnp.float32)

    # O(V*d) / O(V*d^2) terms hoisted to XLA (negligible vs the O(V^2*d) BCE).
    landmark_embed = jnp.take(L.astype(jnp.float32),
                              landmark_indices.astype(jnp.int32), axis=0)
    dist_loss = jnp.sum((H - landmark_embed) ** 2)
    H_proj = jnp.dot(H, W_r.astype(jnp.float32))

    # Tile sizes: rows multiple of 32 (int8 A sublane packing), cols multiple of 128.
    tv = min(_round_up(block_rows, 32), _round_up(V, 32))
    tc = min(_round_up(block_cols, 128), _round_up(V, 128))
    v_rows = _round_up(V, tv)
    v_cols = _round_up(V, tc)

    # Pad to tile multiples; padded rows/cols are masked inside the kernel.
    hp_bf = jnp.pad(H_proj, ((0, v_rows - V), (0, 0))).astype(jnp.bfloat16)
    ht_bf = jnp.pad(H.T, ((0, 0), (0, v_cols - V))).astype(jnp.bfloat16)
    a_i8 = jnp.pad(A.astype(jnp.int8), ((0, v_rows - V), (0, v_cols - V)))

    n_row_blocks = v_rows // tv
    grid = (n_row_blocks, v_cols // tc)

    kernel = functools.partial(
        _bce_sum_kernel, v_true=V, tv=tv, tc=tc,
        mask_rows=(v_rows != V), mask_cols=(v_cols != V), bce_dtype=bce_dtype)

    partials = pl.pallas_call(
        kernel,
        out_shape=jax.ShapeDtypeStruct((n_row_blocks, 8, 128), jnp.float32),
        grid=grid,
        in_specs=[
            pl.BlockSpec((tv, d), lambda i, j: (i, 0)),   # H_proj row block (bf16)
            pl.BlockSpec((d, tc), lambda i, j: (0, j)),   # H^T column block (bf16)
            pl.BlockSpec((tv, tc), lambda i, j: (i, j)),  # A tile (int8)
        ],
        out_specs=pl.BlockSpec((1, 8, 128), lambda i, j: (i, 0, 0)),
        compiler_params=pltpu.CompilerParams(
            dimension_semantics=("parallel", "arbitrary"),
            vmem_limit_bytes=vmem_limit_bytes),
    )(hp_bf, ht_bf, a_i8)

    bce_sum = jnp.sum(partials[:, 0, 0])
    return dist_loss + jnp.asarray(gamma, jnp.float32) * bce_sum


def _llpl_loss_ref(H, A, landmark_indices, L, W_r, gamma):
    """Pure-JAX f32 reference (same math as the PyTorch module)."""
    landmark_embed = L[landmark_indices]
    dist_loss = jnp.sum((H - landmark_embed) ** 2)
    z = (H @ W_r) @ H.T
    bce = jnp.maximum(z, 0.0) - A * z + jnp.log1p(jnp.exp(-jnp.abs(z)))
    return dist_loss + gamma * jnp.sum(bce)


if __name__ == "__main__":
    # Small shapes consistent with the module: |V|=128 nodes, d=32, M=16 landmarks.
    V, d, M = 128, 32, 16
    gamma = 0.5

    key = jax.random.PRNGKey(0)
    k_h, k_a, k_idx, k_l, k_w = jax.random.split(key, 5)

    H = jax.random.normal(k_h, (V, d), dtype=jnp.float32)
    A = jax.random.bernoulli(k_a, p=0.2, shape=(V, V)).astype(jnp.float32)
    landmark_indices = jax.random.randint(k_idx, (V,), 0, M, dtype=jnp.int32)

    L = jax.random.normal(k_l, (M, d), dtype=jnp.float32)
    W_r = jax.random.normal(k_w, (d, d), dtype=jnp.float32)

    ref = jax.block_until_ready(_llpl_loss_ref(H, A, landmark_indices, L, W_r, gamma))

    # f32 BCE chain (safe on all generations, incl. v5e).
    loss = jax.block_until_ready(llpl_loss(H, A, landmark_indices, L, W_r, gamma))
    assert bool(jnp.isfinite(loss)), loss
    # bf16 MXU operands (f32 accumulation) -> small relative deviation from f32 ref.
    assert jnp.allclose(loss, ref, rtol=2e-2, atol=1.0), (loss, ref)

    # bf16 BCE chain (recommended on v6e/v7x where VPU/EUP have bf16 paths).
    loss_bf = jax.block_until_ready(
        llpl_loss(H, A, landmark_indices, L, W_r, gamma, bce_dtype=jnp.bfloat16))
    assert bool(jnp.isfinite(loss_bf)), loss_bf
    assert jnp.allclose(loss_bf, ref, rtol=5e-2, atol=5.0), (loss_bf, ref)

    print("KERNEL_OK")
</pallas_src>

<mosaic_0001>
module attributes {stable_mosaic.version = 11 : i64} {
  func.func @_bce_sum_kernel(%arg0: i32, %arg1: i32, %arg2: memref<128x32xbf16, #tpu.memory_space<vmem>>, %arg3: memref<32x128xbf16, #tpu.memory_space<vmem>>, %arg4: memref<128x128xi8, #tpu.memory_space<vmem>>, %arg5: memref<1x8x128xf32, #tpu.memory_space<vmem>>) attributes {dimension_semantics = [#tpu.dimension_semantics<parallel>, #tpu.dimension_semantics<arbitrary>], iteration_bounds = array<i64: 1, 1>, scalar_prefetch = 0 : i64, scratch_operands = 0 : i64, tpu.core_type = #tpu.core_type<tc>, window_params = [{transform_indices = @transform_0, window_bounds = array<i64: 128, 32>}, {transform_indices = @transform_1, window_bounds = array<i64: 32, 128>}, {transform_indices = @transform_2, window_bounds = array<i64: 128, 128>}, {transform_indices = @transform_3, window_bounds = array<i64: 1, 8, 128>}]} {
    %c0_i32 = arith.constant 0 : i32
    %0 = arith.cmpi eq, %arg1, %c0_i32 : i32
    %1 = arith.extui %0 : i1 to i32
    %c0_i32_0 = arith.constant 0 : i32
    %2 = arith.cmpi ne, %1, %c0_i32_0 : i32
    scf.if %2 {
      %cst_16 = arith.constant 0.000000e+00 : f32
      %28 = vector.broadcast %cst_16 : f32 to vector<1x8x128xf32>
      %c0_17 = arith.constant 0 : index
      %c0_18 = arith.constant 0 : index
      %c0_19 = arith.constant 0 : index
      %29 = vector.load %arg5[%c0_17, %c0_18, %c0_19] : memref<1x8x128xf32, #tpu.memory_space<vmem>>, vector<1x8x128xf32>
      tpu.vector_store %arg5[%c0_17, %c0_18, %c0_19], %28 {strides = array<i32>} : memref<1x8x128xf32, #tpu.memory_space<vmem>>, vector<1x8x128xf32>,
    } else {
    }
    %c0 = arith.constant 0 : index
    %c0_1 = arith.constant 0 : index
    %3 = vector.load %arg2[%c0, %c0_1] : memref<128x32xbf16, #tpu.memory_space<vmem>>, vector<128x32xbf16>
    %c0_2 = arith.constant 0 : index
    %c0_3 = arith.constant 0 : index
    %4 = vector.load %arg3[%c0_2, %c0_3] : memref<32x128xbf16, #tpu.memory_space<vmem>>, vector<32x128xbf16>
    %cst = arith.constant dense<0.000000e+00> : vector<128x128xf32>
    %5 = tpu.matmul %3, %4, %cst {dimension_numbers = #tpu.dot_dimension_numbers<[1], [0], [0], [1], [0, 0, 1, 1], [], []>} : vector<128x32xbf16>, vector<32x128xbf16>, vector<128x128xf32> -> vector<128x128xf32>
    %c0_4 = arith.constant 0 : index
    %c0_5 = arith.constant 0 : index
    %6 = vector.load %arg4[%c0_4, %c0_5] : memref<128x128xi8, #tpu.memory_space<vmem>>, vector<128x128xi8>
    %c0_i8 = arith.constant 0 : i8
    %7 = vector.broadcast %c0_i8 : i8 to vector<128x128xi8>
    %8 = arith.cmpi ne, %6, %7 : vector<128x128xi8>
    %cst_6 = arith.constant 0.000000e+00 : f32
    %9 = vector.broadcast %cst_6 : f32 to vector<128x128xf32>
    %10 = arith.select %8, %5, %9 : vector<128x128xi1>, vector<128x128xf32>
    %cst_7 = arith.constant 0.000000e+00 : f32
    %11 = vector.broadcast %cst_7 : f32 to vector<128x128xf32>
    %12 = arith.maximumf %5, %11 : vector<128x128xf32>
    %13 = arith.subf %12, %10 : vector<128x128xf32>
    %14 = math.absf %5 : vector<128x128xf32>
    %cst_8 = arith.constant 0.000000e+00 : f32
    %15 = vector.broadcast %cst_8 : f32 to vector<128x128xf32>
    %16 = arith.subf %15, %14 : vector<128x128xf32>
    %17 = math.exp %16 : vector<128x128xf32>
    %18 = math.log1p %17 : vector<128x128xf32>
    %19 = arith.addf %13, %18 : vector<128x128xf32>
    %c0_9 = arith.constant 0 : index
    %c0_10 = arith.constant 0 : index
    %c0_11 = arith.constant 0 : index
    %20 = vector.load %arg5[%c0_9, %c0_10, %c0_11] : memref<1x8x128xf32, #tpu.memory_space<vmem>>, vector<1x8x128xf32>
    %21 = vector.shape_cast %19 : vector<128x128xf32> to vector<1x128x128xf32>
    %cst_12 = arith.constant dense<0.000000e+00> : vector<1xf32>
    %22 = vector.multi_reduction <add>, %21, %cst_12 [1, 2] : vector<1x128x128xf32> to vector<1xf32>
    %23 = vector.shape_cast %22 : vector<1xf32> to vector<1x1x1xf32>
    %24 = vector.extract %23[0, 0, 0] : f32 from vector<1x1x1xf32>
    %25 = vector.broadcast %24 : f32 to vector<1x8x128xf32>
    %26 = arith.addf %20, %25 : vector<1x8x128xf32>
    %c0_13 = arith.constant 0 : index
    %c0_14 = arith.constant 0 : index
    %c0_15 = arith.constant 0 : index
    %27 = vector.load %arg5[%c0_13, %c0_14, %c0_15] : memref<1x8x128xf32, #tpu.memory_space<vmem>>, vector<1x8x128xf32>
    tpu.vector_store %arg5[%c0_13, %c0_14, %c0_15], %26 {strides = array<i32>} : memref<1x8x128xf32, #tpu.memory_space<vmem>>, vector<1x8x128xf32>,
    return
  }
  func.func @transform_0(%arg0: i32, %arg1: i32) -> (i32, i32) {
    %c0_i32 = arith.constant 0 : i32
    %c0_i32_0 = arith.constant 0 : i32
    return %arg0, %c0_i32 : i32, i32
  }
  func.func @transform_1(%arg0: i32, %arg1: i32) -> (i32, i32) {
    %c0_i32 = arith.constant 0 : i32
    %c0_i32_0 = arith.constant 0 : i32
    return %c0_i32, %arg1 : i32, i32
  }
  func.func @transform_2(%arg0: i32, %arg1: i32) -> (i32, i32) {
    %c0_i32 = arith.constant 0 : i32
    return %arg0, %arg1 : i32, i32
  }
  func.func @transform_3(%arg0: i32, %arg1: i32) -> (i32, i32, i32) {
    %c0_i32 = arith.constant 0 : i32
    %c0_i32_0 = arith.constant 0 : i32
    %c0_i32_1 = arith.constant 0 : i32
    return %arg0, %c0_i32, %c0_i32_0 : i32, i32, i32
  }
}

</mosaic_0001>

<bundles_post_ra>
// kernel: tpu_custom_call.1
= control target key start
LH: loop header
LB: loop body
LE: loop exit
PB: predicated region body
PF: predicated region fallthrough
CT: control target
= control target key end

     0   :  { %vm95_vm0 = vcmask 261120   ;;  %s1397_s0 = inlined_call_operand.vmem [shape: bf16[128,32], index: 0, kind: input, shape index: {}]   ;;  %s1398_s1 = inlined_call_operand.vmem [shape: bf16[32,128], index: 1, kind: input, shape index: {}]   ;;  %s1399_s2 = inlined_call_operand.vmem [shape: s8[128,128], index: 2, kind: input, shape index: {}]   ;;  %s1400_s3 = inlined_call_operand.hbm [shape: f32[1,8,128], index: 3, kind: output, shape index: {}]  }
   0x1   :  { %v712_v0 = vld [vmem:[%s1398_s1 + $0x8] sm:$0xff]   ;;  %v713_v1 = vld [vmem:[%s1398_s1] sm:$0xff]   ;;  %v718_v6 = vld [vmem:[%s1397_s0 + $0x10] sm:$0xff]  }
   0x2   :  { %683 = vmatprep.subr.bf16.mxu0 %v712_v0  ;;  %703 = vmatprep.subr.bf16.mxu1 %v712_v0  ;;  %v714_v2 = vld [vmem:[%s1397_s0] sm:$0xff]   ;;  %v716_v4 = vld [vmem:[%s1397_s0 + $0x8] sm:$0xff]   ;;  %v719_v7 = vld [vmem:[%s1397_s0 + $0x30] sm:$0xff]  }
   0x3   :  { %684 = vmatpush3.bf16.msra.mxu0 %v712_v0  ;;  %705 = vmatpush3.bf16.msra.mxu1 %v712_v0  ;;  %v715_v3 = vld [vmem:[%s1397_s0 + $0x20] sm:$0xff]   ;;  %v717_v5 = vld [vmem:[%s1397_s0 + $0x28] sm:$0xff]  }
   0x4   :  { %685 = vmatprep.subr.bf16.mxu0 %v713_v1  ;;  %704 = vmatprep.subr.bf16.mxu1 %v713_v1 }
   0x5   :  { %687 = vmatprep.mubr.msk.bf16.mxu0 %vm95_vm0, %v714_v2  ;;  %695 = vmatprep.mubr.msk.bf16.mxu1 %vm95_vm0, %v715_v3 }
   0x7   :  { %686 = vmatpush3.bf16.msra.mxu0 %v713_v1  ;;  %706 = vmatpush3.bf16.msra.mxu1 %v713_v1 }
   0xa   :  { %688 = vmatmul.mubr.msk.bf16.vlgmr.msra.gmra.mxu0 %vm95_vm0, %v716_v4  ;;  %696 = vmatmul.mubr.msk.bf16.vlgmr.msra.gmra.mxu1 %vm95_vm0, %v717_v5 }
   0xb   :  { %8 = vsyncpa [#allocation3], 0  ;;  %691 = vmatprep.mubr.msk.bf16.mxu0 %vm95_vm0, %v718_v6  ;;  %699 = vmatprep.mubr.msk.bf16.mxu1 %vm95_vm0, %v719_v7  ;;  %v720_v8 = vld [vmem:[%s1397_s0 + $0x18] sm:$0xff]   ;;  %v217_v10 = vld [vmem:[%s1399_s2] sm:$0xff]  ;;  %v808_v11 = vmov 0  }
   0xc   :  { %v721_v9 = vld [vmem:[%s1397_s0 + $0x38] sm:$0xff]   ;;  %vm221_vm1 = vnez %v217_v10  ;;  %v219_v14 = vld [vmem:[%s1399_s2 + $0x10] sm:$0xff]  ;;  %v218_v17 = vld [vmem:[%s1399_s2 + $0x8] sm:$0xff] }
   0xd   :  { %v225_v12 = vsel %vm221_vm1, 16843009, %v808_v11  ;;  %vm223_vm2 = vnez %v219_v14  ;;  %vm222_vm3 = vnez %v218_v17  ;;  %v220_v33 = vld [vmem:[%s1399_s2 + $0x18] sm:$0xff]  ;;  %s809_s2 = smov [#allocation2]  }
   0xe   :  { %v231_v13 = vunpack.c.2.s8 %v225_v12  ;;  %v229_v15 = vunpack.c.0.s8 %v225_v12  ;;  %v232_v16 = vunpack.c.3.s8 %v225_v12  ;;  %v230_v22 = vunpack.c.1.s8 %v225_v12  ;;  %s647_s11 = sshll.u32 %s809_s2, 4  ;;  %s648_s11 = int_to_ptr.vmem [resolvable:$true] %s647_s11 }
   0xf   :  { %v227_v23 = vsel %vm223_vm2, 16843009, %v808_v11  ;;  %v884_v25 = vsel %vm222_vm3, 16843009, %v808_v11  ;;  %vm224_vm7 = vnez %v220_v33  ;;  %s786_s13 = scalar_lea.vmem %s648_s11, 128  ;;  %p791_p1 = scmp.lt.s32.totalorder %s648_s11, %s648_s11 }
  0x10   :  { %v249_v19 = vpack.c.b16 %v231_v13, %v231_v13  ;;  %v245_v20 = vpack.c.b16 %v229_v15, %v229_v15  ;;  %v251_v21 = vpack.c.b16 %v232_v16, %v232_v16  ;;  %v239_v30 = vunpack.c.2.s8 %v227_v23  ;;  %p787_p0 = scmp.ne.s32.totalorder %s648_s11, %s786_s13  ;;  %p792_p2 = scmp.lt.s32.totalorder %s786_s13, %s786_s13 }
  0x11   :  { %v247_v31 = vpack.c.b16 %v230_v22, %v230_v22  ;;  %v235_v32 = vunpack.c.2.s8 %v884_v25  ;;  %v233_v38 = vunpack.c.0.s8 %v884_v25  ;;  %v237_v39 = vunpack.c.0.s8 %v227_v23 }
  0x12   :  { %692 = vmatmul.mubr.msk.bf16.gmra.mxu0 %vm95_vm0, %v720_v8  ;;  %700 = vmatmul.mubr.msk.bf16.gmra.mxu1 %vm95_vm0, %v721_v9  ;;  %v250_v26 = vpack.c.b8 %v249_v19, %v249_v19  ;;  %v246_v27 = vpack.c.b8 %v245_v20, %v245_v20  ;;  %v252_v29 = vpack.c.b8 %v251_v21, %v251_v21  ;;  %v240_v40 = vunpack.c.3.s8 %v227_v23  ;;  %p793_p3 = por %p792_p2, %p791_p1 }
  0x13   :  { %v265_v35 = vpack.c.b16 %v239_v30, %v239_v30  ;;  %v248_v36 = vpack.c.b8 %v247_v31, %v247_v31  ;;  %v257_v37 = vpack.c.b16 %v235_v32, %v235_v32  ;;  %v228_v43 = vsel %vm224_vm7, 16843009, %v808_v11 }
  0x14   :  { %vm279_vm4 = vnez %v250_v26  ;;  %vm277_vm5 = vnez %v246_v27  ;;  %vm280_vm6 = vnez %v252_v29  ;;  %v253_v49 = vpack.c.b16 %v233_v38, %v233_v38  ;;  %p794_p4 = pnand %p793_p3, %p787_p0 }
  0x15   :  { %v295_v41 = vsel %vm279_vm4, 16843009, %v808_v11  ;;  %v899_v44 = vsel %vm277_vm5, 16843009, %v808_v11  ;;  %v903_v46 = vsel %vm280_vm6, 16843009, %v808_v11  ;;  %v266_v47 = vpack.c.b8 %v265_v35, %v265_v35 }
  0x16   :  { %vm278_vm8 = vnez %v248_v36  ;;  %v258_v48 = vpack.c.b8 %v257_v37, %v257_v37  ;;  %v261_v50 = vpack.c.b16 %v237_v39, %v237_v39  ;;  %v267_v51 = vpack.c.b16 %v240_v40, %v240_v40 }
  0x17   :  { %v238_v52 = vunpack.c.1.s8 %v227_v23  ;;  %v243_v53 = vunpack.c.2.s8 %v228_v43  ;;  %v311_v54 = vunpack.c.0.s8 %v295_v41  ;;  %v236_v56 = vunpack.c.3.s8 %v884_v25 }
  0x18   :  { %v309_v57 = vunpack.c.0.s8 %v899_v44  ;;  %v312_v59 = vunpack.c.0.s8 %v903_v46  ;;  %v909_v60 = vsel %vm278_vm8, 16843009, %v808_v11  ;;  %vm912_vm9 = vnez %v266_v47 }
  0x19   :  { %vm283_vm10 = vnez %v258_v48  ;;  %v254_v0 = vpack.c.b8 %v253_v49, %v253_v49  ;;  %v262_v1 = vpack.c.b8 %v261_v50, %v261_v50  ;;  %v268_v2 = vpack.c.b8 %v267_v51, %v267_v51 }
  0x1a   :  { %v263_v3 = vpack.c.b16 %v238_v52, %v238_v52  ;;  %v273_v4 = vpack.c.b16 %v243_v53, %v243_v53  ;;  %v241_v6 = vunpack.c.0.s8 %v228_v43  ;;  %v259_v7 = vpack.c.b16 %v236_v56, %v236_v56 }
  0x1b   :  { %v234_v8 = vunpack.c.1.s8 %v884_v25  ;;  %v922_v12 = vsel %vm283_vm10, 16843009, %v808_v11  ;;  %v244_v13 = vunpack.c.3.s8 %v228_v43  ;;  %v242_v14 = vunpack.c.1.s8 %v228_v43 }
  0x1c   :  { %v303_v16 = vsel %vm912_vm9, 16843009, %v808_v11  ;;  %vm930_vm11 = vnez %v254_v0  ;;  %vm934_vm12 = vnez %v262_v1  ;;  %vm938_vm13 = vnez %v268_v2 }
  0x1d   :  { %v264_v23 = vpack.c.b8 %v263_v3, %v263_v3  ;;  %v274_v25 = vpack.c.b8 %v273_v4, %v273_v4  ;;  %v269_v26 = vpack.c.b16 %v241_v6, %v241_v6  ;;  %v260_v27 = vpack.c.b8 %v259_v7, %v259_v7 }
  0x1e   :  { %v255_v29 = vpack.c.b16 %v234_v8, %v234_v8  ;;  %v275_v32 = vpack.c.b16 %v244_v13, %v244_v13  ;;  %v271_v33 = vpack.c.b16 %v242_v14, %v242_v14  ;;  %vm945_vm14 = vcmp.ne.s32.totalorder %v311_v54, 0 }
  0x1f   :  { %v310_v38 = vunpack.c.0.s8 %v909_v60  ;;  %v315_v39 = vunpack.c.0.s8 %v922_v12  ;;  %v319_v40 = vunpack.c.0.s8 %v303_v16  ;;  %v301_v41 = vsel %vm934_vm12, 16843009, %v808_v11 }
  0x20   :  { %v960_v43 = vsel %vm930_vm11, 16843009, %v808_v11  ;;  %vm962_vm15 = vnez %v264_v23  ;;  %vm966_vm0 = vnez %v274_v25  ;;  %v270_v47 = vpack.c.b8 %v269_v26, %v269_v26 }
  0x21   :  { %vm970_vm1 = vnez %v260_v27  ;;  %v276_v51 = vpack.c.b8 %v275_v32, %v275_v32  ;;  %v256_v52 = vpack.c.b8 %v255_v29, %v255_v29  ;;  %v272_v53 = vpack.c.b8 %v271_v33, %v271_v33 }
  0x22   :  { %vm977_vm2 = vcmp.ne.s32.totalorder %v309_v57, 0  ;;  %v317_v56 = vunpack.c.0.s8 %v301_v41  ;;  %vm981_vm3 = vcmp.ne.s32.totalorder %v319_v40, 0  ;;  %v313_v0 = vunpack.c.0.s8 %v960_v43 }
  0x23   :  { %v302_v1 = vsel %vm962_vm15, 16843009, %v808_v11  ;;  %v993_v57 = vsel %vm966_vm0, 16843009, %v808_v11  ;;  %vm289_vm4 = vnez %v270_v47  ;;  %v998_v2 = vsel %vm970_vm1, 16843009, %v808_v11 }
  0x24   :  { %vm292_vm5 = vnez %v276_v51  ;;  %vm282_vm6 = vnez %v256_v52  ;;  %vm290_vm7 = vnez %v272_v53  ;;  %vm1002_vm8 = vcmp.ne.s32.totalorder %v317_v56, 0 }
  0x25   :  { %vm1009_vm9 = vcmp.ne.s32.totalorder %v312_v59, 0  ;;  %v323_v14 = vunpack.c.0.s8 %v993_v57  ;;  %v1019_v20 = vsel %vm292_vm5, 16843009, %v808_v11  ;;  %v1022_v21 = vsel %vm282_vm6, 16843009, %v808_v11 }
  0x26   :  { %v1025_v46 = vsel %vm290_vm7, 16843009, %v808_v11  ;;  %vm1046_vm11 = vcmp.ne.s32.totalorder %v310_v38, 0  ;;  %v314_v44 = vunpack.c.0.s8 %v1022_v21 }
  0x27   :  { %v322_v38 = vunpack.c.0.s8 %v1025_v46 }
  0xca   :  { %v878_v18 = vpop.f32.mrf.mxu0  ;;  %v919_v9 = vpop.f32.mrf.mxu1 }
  0xcb   :  { %v391_v61 = vand.u32 2147483647, %v878_v18  ;;  %v399_v54 = vand.u32 2147483647, %v919_v9  ;;  %v343_v22 = vsel %vm945_vm14, %v878_v18, 0.0  ;;  %v359_v23 = vmax.f32 %v878_v18, 0.0 }
  0xcc   :  { %v881_v24 = vpop.f32.mrf.mxu0  ;;  %v942_v30 = vpop.f32.mrf.mxu1  ;;  %vm1087_vm14 = vcmp.ne.s32.totalorder %v313_v0, 0 }
  0xcd   :  { %v389_v45 = vand.u32 2147483647, %v881_v24  ;;  %v407_v15 = vsub.f32 0.0, %v391_v61  ;;  %v397_v7 = vand.u32 2147483647, %v942_v30  ;;  %v341_v47 = vsel %vm977_vm2, %v881_v24, 0.0 }
  0xce   :  { %v886_v28 = vpop.f32.mrf.mxu0  ;;  %v974_v49 = vpop.f32.mrf.mxu1  ;;  %v357_v53 = vmax.f32 %v881_v24, 0.0  ;;  %v365_v60 = vmax.f32 %v942_v30, 0.0  ;;  %v349_v24 = vsel %vm1002_vm8, %v942_v30, 0.0 }
  0xcf   :  { %v405_v58 = vsub.f32 0.0, %v389_v45  ;;  %v392_v17 = vand.u32 2147483647, %v886_v28  ;;  %v425_v36 = vmul.f32 1.442695, %v407_v15  ;;  %v413_v33 = vsub.f32 0.0, %v397_v7 }
  0xd0   :  { %v892_v34 = vpop.f32.mrf.mxu0  ;;  %v1000_v3 = vpop.f32.mrf.mxu1  ;;  %v305_v15 = vsel %vm289_vm4, 16843009, %v808_v11  ;;  %v400_v35 = vand.u32 2147483647, %v974_v49  ;;  %v1060_v45 = vsub.f32 %v359_v23, %v343_v22  ;;  %v1097_v6 = vsub.f32 %v357_v53, %v341_v47 }
  0xd1   :  { %v390_v42 = vand.u32 2147483647, %v892_v34  ;;  %v421_v10 = vmul.f32 1.442695, %v405_v58  ;;  %v408_v37 = vsub.f32 0.0, %v392_v17  ;;  %v316_v17 = vunpack.c.0.s8 %v998_v2 }
  0xd2   :  { %v916_v63 = vpop.f32.mrf.mxu0  ;;  %v398_v26 = vand.u32 2147483647, %v1000_v3  ;;  %v1038_v27 = vpop.f32.mrf.mxu1  ;;  %v344_v43 = vsel %vm1009_vm9, %v886_v28, 0.0  ;;  %v368_v22 = vmax.f32 %v974_v49, 0.0  ;;  %vm1220_vm4 = vcmp.ne.s32.totalorder %v314_v44, 0 }
  0xd3   :  { %v406_v55 = vsub.f32 0.0, %v390_v42  ;;  %v304_v42 = vsel %vm938_vm13, 16843009, %v808_v11  ;;  %v427_v58 = vmul.f32 1.442695, %v408_v37  ;;  %v351_v11 = vsel %vm981_vm3, %v919_v9, 0.0 }
  0xd4   :  { %v928_v19 = vpop.f32.mrf.mxu0  ;;  %v320_v61 = vunpack.c.0.s8 %v304_v42  ;;  %v395_v62 = vand.u32 2147483647, %v916_v63  ;;  %v321_v37 = vunpack.c.0.s8 %v305_v15  ;;  %v1066_v51 = vpop.f32.mrf.mxu1  ;;  %vm1073_vm13 = vcmp.ne.s32.totalorder %v315_v39, 0 }
  0xd5   :  { %v423_v5 = vmul.f32 1.442695, %v406_v55  ;;  %v393_v31 = vand.u32 2147483647, %v928_v19  ;;  %v401_v39 = vand.u32 2147483647, %v1066_v51  ;;  %v1108_v15 = vsub.f32 %v365_v60, %v349_v24 }
  0xd6   :  { %v411_v13 = vsub.f32 0.0, %v395_v62  ;;  %v1015_v16 = vpop.f32.mrf.mxu0  ;;  %vm1033_vm10 = vcmp.ne.s32.totalorder %v320_v61, 0  ;;  %v437_v61 = vmul.f32 1.442695, %v413_v33  ;;  %v416_v62 = vsub.f32 0.0, %v400_v35  ;;  %v1093_v7 = vpop.f32.mrf.mxu1 }
  0xd7   :  { %722 = vpow2.f32 %v423_v5  ;;  %v409_v50 = vsub.f32 0.0, %v393_v31  ;;  %v415_v5 = vsub.f32 0.0, %v399_v54  ;;  %v367_v31 = vmax.f32 %v919_v9, 0.0 }
  0xd8   :  { %724 = vpow2.f32 %v421_v10  ;;  %v318_v10 = vunpack.c.0.s8 %v302_v1  ;;  %v396_v40 = vand.u32 2147483647, %v1015_v16  ;;  %v324_v9 = vunpack.c.0.s8 %v1019_v20 }
  0xd9   :  { %726 = vpow2.f32 %v425_v36  ;;  %v429_v4 = vmul.f32 1.442695, %v409_v50  ;;  %v441_v32 = vmul.f32 1.442695, %v415_v5  ;;  %v433_v36 = vmul.f32 1.442695, %v411_v13 }
  0xda   :  { %728 = vpow2.f32 %v427_v58  ;;  %vm1053_vm12 = vcmp.ne.s32.totalorder %v318_v10, 0  ;;  %v414_v50 = vsub.f32 0.0, %v398_v26  ;;  %v1068_v52 = vsub.f32 %v367_v31, %v351_v11  ;;  %v1077_v58 = vpop.f32.mrf.mxu0 }
  0xdb   :  { %730 = vpow2.f32 %v429_v4  ;;  %v412_v56 = vsub.f32 0.0, %v396_v40  ;;  %v360_v4 = vmax.f32 %v886_v28, 0.0  ;;  %v394_v10 = vand.u32 2147483647, %v1077_v58 }
  0xdc   :  { %732 = vpow2.f32 %v441_v32  ;;  %v439_v5 = vmul.f32 1.442695, %v414_v50  ;;  %vm1102_vm15 = vcmp.ne.s32.totalorder %v321_v37, 0  ;;  %v443_v23 = vmul.f32 1.442695, %v416_v62 }
  0xdd   :  { %734 = vpow2.f32 %v433_v36  ;;  %v435_v1 = vmul.f32 1.442695, %v412_v56  ;;  %v352_v26 = vsel %vm1033_vm10, %v974_v49, 0.0  ;;  %v403_v8 = vand.u32 2147483647, %v1038_v27  ;;  %v1127_v49 = vpop.f32.mrf.mxu1 }
  0xde   :  { %v417_v28 = vsub.f32 0.0, %v401_v39  ;;  %vm1117_vm0 = vcmp.ne.s32.totalorder %v316_v17, 0  ;;  %v410_v31 = vsub.f32 0.0, %v394_v10  ;;  %v1121_v32 = vsub.f32 %v360_v4, %v344_v43 }
  0xdf   :  { %v342_v33 = vsel %vm1046_vm11, %v892_v34, 0.0  ;;  %v358_v35 = vmax.f32 %v892_v34, 0.0  ;;  %v404_v17 = vand.u32 2147483647, %v1093_v7  ;;  %v1133_v37 = vsub.f32 %v368_v22, %v352_v26 }
  0xe0   :  { %v431_v36 = vmul.f32 1.442695, %v410_v31  ;;  %v350_v18 = vsel %vm1053_vm12, %v1000_v3, 0.0  ;;  %v366_v34 = vmax.f32 %v1000_v3, 0.0  ;;  %v419_v40 = vsub.f32 0.0, %v403_v8 }
  0xe1   :  { %v402_v47 = vand.u32 2147483647, %v1127_v49  ;;  %v363_v50 = vmax.f32 %v916_v63, 0.0  ;;  %v361_v53 = vmax.f32 %v928_v19, 0.0  ;;  %v420_v60 = vsub.f32 0.0, %v404_v17 }
  0xe2   :  { %v374_v62 = vsub.f32 %v358_v35, %v342_v33  ;;  %v1149_v24 = vsub.f32 %v366_v34, %v350_v18  ;;  %v449_v4 = vmul.f32 1.442695, %v419_v40  ;;  %v348_v35 = vsel %vm1117_vm0, %v1015_v16, 0.0 }
  0xe3   :  { %v418_v3 = vsub.f32 0.0, %v402_v47  ;;  %v451_v26 = vmul.f32 1.442695, %v420_v60  ;;  %vm1294_vm11 = vcmp.ne.s32.totalorder %v322_v38, 0  ;;  %vm1336_vm0 = vcmp.ne.s32.totalorder %v324_v9, 0 }
  0xe4   :  { %v1027_v59 = vpop.eup %722  ;;  %v1470_v20 = vmax.f32 %v1066_v51, 0.0 }
  0xe5   :  { %v1040_v29 = vpop.eup %724  ;;  %v462_v41 = vadd.f32 1.0, %v1027_v59  ;;  %v465_v42 = vmul.f32 -0.5, %v1027_v59  ;;  %v468_v31 = vand.u32 2147483647, %v1027_v59 }
  0xe6   :  { %v453_v48 = vadd.f32 1.0, %v1040_v29  ;;  %v1079_v55 = vpop.eup %726  ;;  %v459_v47 = vand.u32 2147483647, %v1040_v29 }
  0xe7   :  { %736 = vlog2.f32 %v462_v41  ;;  %v471_v30 = vadd.f32 1.0, %v1079_v55  ;;  %v1106_v13 = vpop.eup %728  ;;  %v445_v41 = vmul.f32 1.442695, %v417_v28  ;;  %v466_v12 = vadd.f32 1.0, %v465_v42 }
  0xe8   :  { %738 = vlog2.f32 %v453_v48  ;;  %v1129_v25 = vpop.eup %730  ;;  %v480_v2 = vadd.f32 1.0, %v1106_v13  ;;  %v347_v48 = vsel %vm1073_vm13, %v916_v63, 0.0  ;;  %v345_v63 = vsel %vm1087_vm14, %v928_v19, 0.0 }
  0xe9   :  { %740 = vpow2.f32 %v435_v1  ;;  %v489_v56 = vadd.f32 1.0, %v1129_v25  ;;  %v456_v1 = vmul.f32 -0.5, %v1040_v29  ;;  %v1159_v43 = vsub.f32 %v363_v50, %v347_v48 }
  0xea   :  { %742 = vpow2.f32 %v437_v61  ;;  %v1147_v61 = vpop.eup %732  ;;  %v1164_v19 = vsub.f32 %v361_v53, %v345_v63  ;;  %v477_v40 = vand.u32 2147483647, %v1079_v55  ;;  %v467_v53 = vmul.f32 %v1027_v59, %v466_v12 }
  0xeb   :  { %744 = vpow2.f32 %v439_v5  ;;  %v1155_v54 = vpop.eup %734  ;;  %v447_v5 = vmul.f32 1.442695, %v418_v3  ;;  %v543_v28 = vadd.f32 1.0, %v1147_v61  ;;  %v457_v17 = vadd.f32 1.0, %v456_v1 }
  0xec   :  { %746 = vlog2.f32 %v471_v30  ;;  %v474_v30 = vmul.f32 -0.5, %v1079_v55  ;;  %v507_v18 = vadd.f32 1.0, %v1155_v54  ;;  %vm1186_vm1 = vcmp.lt.f32.partialorder %v468_v31, 0.0004427343 }
  0xed   :  { %748 = vpow2.f32 %v443_v23  ;;  %vm1199_vm2 = vcmp.lt.f32.partialorder %v459_v47, 0.0004427343  ;;  %v492_v47 = vmul.f32 -0.5, %v1129_v25  ;;  %vm1212_vm3 = vcmp.lt.f32.partialorder %v477_v40, 0.0004427343 }
  0xee   :  { %750 = vpow2.f32 %v431_v36  ;;  %v475_v34 = vadd.f32 1.0, %v474_v30  ;;  %vm1316_vm13 = vcmp.ne.s32.totalorder %v323_v14, 0 }
  0xef   :  { %752 = vlog2.f32 %v480_v2 }
  0xf0   :  { %754 = vpow2.f32 %v445_v41  ;;  %v546_v41 = vmul.f32 -0.5, %v1147_v61  ;;  %v476_v30 = vmul.f32 %v1079_v55, %v475_v34 }
  0xf1   :  { %756 = vlog2.f32 %v489_v56 }
  0xf2   :  { %758 = vpow2.f32 %v447_v5  ;;  %v483_v5 = vmul.f32 -0.5, %v1106_v13 }
  0xf3   :  { %760 = vpow2.f32 %v449_v4  ;;  %v458_v4 = vmul.f32 %v1040_v29, %v457_v17 }
  0xf4   :  { %v737_v10 = vpop.eup %736  ;;  %762 = vpow2.f32 %v451_v26  ;;  %v484_v34 = vadd.f32 1.0, %v483_v5 }
  0xf5   :  { %v739_v23 = vpop.eup %738  ;;  %v464_v36 = vmul.f32 0.6931472, %v737_v10  ;;  %764 = vlog2.f32 %v543_v28 }
  0xf6   :  { %v1166_v8 = vpop.eup %740  ;;  %v455_v50 = vmul.f32 0.6931472, %v739_v23  ;;  %766 = vlog2.f32 %v507_v18  ;;  %v547_v23 = vadd.f32 1.0, %v546_v41  ;;  %v486_v41 = vand.u32 2147483647, %v1106_v13 }
  0xf7   :  { %v1174_v2 = vpop.eup %742  ;;  %v516_v56 = vadd.f32 1.0, %v1166_v8  ;;  %v470_v59 = vsel %vm1186_vm1, %v467_v53, %v464_v36 }
  0xf8   :  { %v1180_v48 = vpop.eup %744  ;;  %v525_v60 = vadd.f32 1.0, %v1174_v2  ;;  %v528_v3 = vmul.f32 -0.5, %v1174_v2  ;;  %v461_v29 = vsel %vm1199_vm2, %v458_v4, %v455_v50  ;;  %v598_v55 = vadd.f32 %v470_v59, %v374_v62 }
  0xf9   :  { %v747_v42 = vpop.eup %746  ;;  %v534_v26 = vadd.f32 1.0, %v1180_v48  ;;  %768 = vlog2.f32 %v516_v56  ;;  %v549_v50 = vand.u32 2147483647, %v1147_v61  ;;  %v597_v56 = vadd.f32 %v461_v29, %v1097_v6 }
  0xfa   :  { %v1190_v1 = vpop.eup %748  ;;  %v473_v28 = vmul.f32 0.6931472, %v747_v42  ;;  %770 = vlog2.f32 %v525_v60  ;;  %v529_v36 = vadd.f32 1.0, %v528_v3  ;;  %v1227_v40 = vmul.f32 %v1147_v61, %v547_v23 }
  0xfb   :  { %v1196_v10 = vpop.eup %750  ;;  %v552_v18 = vadd.f32 1.0, %v1190_v1  ;;  %v531_v63 = vand.u32 2147483647, %v1174_v2  ;;  %v555_v21 = vmul.f32 -0.5, %v1190_v1  ;;  %v614_v44 = vadd.f32 %v598_v55, %v597_v56 }
  0xfc   :  { %v498_v31 = vadd.f32 1.0, %v1196_v10  ;;  %v753_v17 = vpop.eup %752  ;;  %v479_v3 = vsel %vm1212_vm3, %v476_v30, %v473_v28  ;;  %v1233_v6 = vmul.f32 %v1174_v2, %v529_v36  ;;  %v485_v59 = vmul.f32 %v1106_v13, %v484_v34 }
  0xfd   :  { %v1210_v53 = vpop.eup %754  ;;  %v482_v4 = vmul.f32 0.6931472, %v753_v17  ;;  %vm1237_vm5 = vcmp.lt.f32.partialorder %v486_v41, 0.0004427343  ;;  %v493_v61 = vadd.f32 1.0, %v492_v47  ;;  %v510_v28 = vmul.f32 -0.5, %v1155_v54 }
  0xfe   :  { %772 = vlog2.f32 %v498_v31  ;;  %v757_v60 = vpop.eup %756  ;;  %v561_v30 = vadd.f32 1.0, %v1210_v53  ;;  %v558_v2 = vand.u32 2147483647, %v1190_v1  ;;  %v495_v29 = vand.u32 2147483647, %v1129_v25 }
  0xff   :  { %774 = vlog2.f32 %v534_v26  ;;  %v1230_v5 = vpop.eup %758  ;;  %v599_v26 = vadd.f32 %v479_v3, %v1060_v45  ;;  %v488_v13 = vsel %vm1237_vm5, %v485_v59, %v482_v4  ;;  %v491_v31 = vmul.f32 0.6931472, %v757_v60 }
 0x100   :  { %776 = vlog2.f32 %v552_v18  ;;  %v1242_v23 = vpop.eup %760  ;;  %v501_v17 = vmul.f32 -0.5, %v1196_v10  ;;  %v570_v36 = vadd.f32 1.0, %v1230_v5  ;;  %v1254_v55 = vadd.f32 1.0, %v555_v21 }
 0x101   :  { %v1252_v18 = vpop.eup %762  ;;  %v615_v34 = vadd.f32 %v614_v44, %v599_v26  ;;  %v537_v45 = vmul.f32 -0.5, %v1180_v48  ;;  %v540_v41 = vand.u32 2147483647, %v1180_v48  ;;  %v494_v42 = vmul.f32 %v1129_v25, %v493_v61 }
 0x102   :  { %v765_v47 = vpop.eup %764  ;;  %778 = vlog2.f32 %v561_v30  ;;  %v519_v56 = vmul.f32 -0.5, %v1166_v8  ;;  %v579_v60 = vadd.f32 1.0, %v1242_v23  ;;  %vm1261_vm6 = vcmp.lt.f32.partialorder %v531_v63, 0.0004427343 }
 0x103   :  { %v767_v3 = vpop.eup %766  ;;  %v600_v21 = vadd.f32 %v488_v13, %v1121_v32  ;;  %v511_v44 = vadd.f32 1.0, %v510_v28  ;;  %v513_v59 = vand.u32 2147483647, %v1155_v54  ;;  %vm1267_vm7 = vcmp.lt.f32.partialorder %v495_v29, 0.0004427343 }
 0x104   :  { %v497_v25 = vsel %vm1267_vm7, %v494_v42, %v491_v31  ;;  %v502_v61 = vadd.f32 1.0, %v501_v17  ;;  %780 = vlog2.f32 %v570_v36  ;;  %v588_v30 = vadd.f32 1.0, %v1252_v18 }
 0x105   :  { %vm1274_vm8 = vcmp.lt.f32.partialorder %v549_v50, 0.0004427343  ;;  %v538_v32 = vadd.f32 1.0, %v537_v45  ;;  %v616_v28 = vadd.f32 %v615_v34, %v600_v21  ;;  %v362_v13 = vmax.f32 %v1077_v58, 0.0 }
 0x106   :  { %v769_v63 = vpop.eup %768  ;;  %v504_v29 = vand.u32 2147483647, %v1196_v10  ;;  %v509_v33 = vmul.f32 0.6931472, %v767_v3  ;;  %v520_v22 = vadd.f32 1.0, %v519_v56  ;;  %v346_v31 = vsel %vm1220_vm4, %v1077_v58, 0.0 }
 0x107   :  { %v771_v39 = vpop.eup %770  ;;  %782 = vlog2.f32 %v579_v60  ;;  %v512_v50 = vmul.f32 %v1155_v54, %v511_v44  ;;  %v601_v36 = vadd.f32 %v497_v25, %v1164_v19  ;;  %v364_v45 = vmax.f32 %v1015_v16, 0.0 }
 0x108   :  { %v522_v34 = vand.u32 2147483647, %v1166_v8  ;;  %v518_v21 = vmul.f32 0.6931472, %v769_v63  ;;  %v503_v3 = vmul.f32 %v1196_v10, %v502_v61  ;;  %784 = vlog2.f32 %v588_v30 }
 0x109   :  { %vm1288_vm9 = vcmp.lt.f32.partialorder %v513_v59, 0.0004427343  ;;  %v617_v58 = vadd.f32 %v616_v28, %v601_v36  ;;  %v378_v62 = vsub.f32 %v362_v13, %v346_v31  ;;  %vm505_vm10 = vcmp.lt.f32.partialorder %v504_v29, 0.0004427343 }
 0x10a   :  { %v527_v60 = vmul.f32 0.6931472, %v771_v39  ;;  %v515_v44 = vsel %vm1288_vm9, %v512_v50, %v509_v33  ;;  %v521_v10 = vmul.f32 %v1166_v8, %v520_v22  ;;  %v545_v25 = vmul.f32 0.6931472, %v765_v47 }
 0x10b   :  { %v773_v17 = vpop.eup %772  ;;  %vm1301_vm12 = vcmp.lt.f32.partialorder %v522_v34, 0.0004427343  ;;  %v539_v46 = vmul.f32 %v1180_v48, %v538_v32  ;;  %v564_v38 = vmul.f32 -0.5, %v1210_v53  ;;  %v380_v39 = vsub.f32 %v364_v45, %v348_v35 }
 0x10c   :  { %v775_v42 = vpop.eup %774  ;;  %v500_v12 = vmul.f32 0.6931472, %v773_v17  ;;  %v524_v22 = vsel %vm1301_vm12, %v521_v10, %v518_v21  ;;  %v603_v33 = vadd.f32 %v515_v44, %v1159_v43  ;;  %v582_v32 = vmul.f32 -0.5, %v1242_v23 }
 0x10d   :  { %v777_v19 = vpop.eup %776  ;;  %v536_v61 = vmul.f32 0.6931472, %v775_v42  ;;  %v533_v16 = vsel %vm1261_vm6, %v1233_v6, %v527_v60  ;;  %v557_v11 = vmul.f32 %v1190_v1, %v1254_v55  ;;  %vm1326_vm14 = vcmp.lt.f32.partialorder %v540_v41, 0.0004427343 }
 0x10e   :  { %v506_v59 = vsel %vm505_vm10, %v503_v3, %v500_v12  ;;  %v554_v8 = vmul.f32 0.6931472, %v777_v19  ;;  %v573_v57 = vmul.f32 -0.5, %v1230_v5  ;;  %v567_v28 = vand.u32 2147483647, %v1210_v53 }
 0x10f   :  { %v602_v63 = vadd.f32 %v506_v59, %v378_v62  ;;  %v779_v14 = vpop.eup %778  ;;  %v542_v43 = vsel %vm1326_vm14, %v539_v46, %v536_v61  ;;  %v604_v13 = vadd.f32 %v524_v22, %v380_v39  ;;  %v551_v41 = vsel %vm1274_vm8, %v1227_v40, %v545_v25 }
 0x110   :  { %vm1345_vm1 = vcmp.lt.f32.partialorder %v558_v2, 0.0004427343  ;;  %v1469_v29 = vsel %vm1102_vm15, %v1066_v51, 0.0  ;;  %v565_v31 = vadd.f32 1.0, %v564_v38  ;;  %v605_v50 = vadd.f32 %v533_v16, %v1108_v15 }
 0x111   :  { %v618_v48 = vadd.f32 %v617_v58, %v602_v63  ;;  %v385_v9 = vsub.f32 %v1470_v20, %v1469_v29  ;;  %v781_v17 = vpop.eup %780  ;;  %v560_v40 = vsel %vm1345_vm1, %v557_v11, %v554_v8  ;;  %v583_v1 = vadd.f32 1.0, %v582_v32 }
 0x112   :  { %v606_v2 = vadd.f32 %v542_v43, %v1149_v24  ;;  %v563_v36 = vmul.f32 0.6931472, %v779_v14  ;;  %v574_v45 = vadd.f32 1.0, %v573_v57  ;;  %v591_v0 = vmul.f32 -0.5, %v1252_v18 }
 0x113   :  { %v619_v55 = vadd.f32 %v618_v48, %v603_v33  ;;  %vm1360_vm15 = vcmp.lt.f32.partialorder %v567_v28, 0.0004427343  ;;  %v576_v21 = vand.u32 2147483647, %v1230_v5  ;;  %v585_v15 = vand.u32 2147483647, %v1242_v23 }
 0x114   :  { %v783_v34 = vpop.eup %782  ;;  %v607_v12 = vadd.f32 %v551_v41, %v1068_v52  ;;  %v566_v3 = vmul.f32 %v1210_v53, %v565_v31  ;;  %v354_v24 = vsel %vm1294_vm11, %v1127_v49, 0.0  ;;  %v572_v56 = vmul.f32 0.6931472, %v781_v17 }
 0x115   :  { %v620_v26 = vadd.f32 %v619_v55, %v604_v13  ;;  %v785_v58 = vpop.eup %784  ;;  %v608_v62 = vadd.f32 %v560_v40, %v1133_v37  ;;  %v370_v19 = vmax.f32 %v1127_v49, 0.0  ;;  %v584_v60 = vmul.f32 %v1242_v23, %v583_v1 }
 0x116   :  { %v569_v10 = vsel %vm1360_vm15, %v566_v3, %v563_v36  ;;  %v575_v52 = vmul.f32 %v1230_v5, %v574_v45  ;;  %v581_v59 = vmul.f32 0.6931472, %v783_v34  ;;  %v592_v53 = vadd.f32 1.0, %v591_v0 }
 0x117   :  { %v621_v51 = vadd.f32 %v620_v26, %v605_v50  ;;  %vm577_vm2 = vcmp.lt.f32.partialorder %v576_v21, 0.0004427343  ;;  %vm1377_vm3 = vcmp.lt.f32.partialorder %v585_v15, 0.0004427343  ;;  %v594_v25 = vand.u32 2147483647, %v1252_v18 }
 0x118   :  { %v355_v49 = vsel %vm1316_vm13, %v1038_v27, 0.0  ;;  %v578_v23 = vsel %vm577_vm2, %v575_v52, %v572_v56  ;;  %v590_v61 = vmul.f32 0.6931472, %v785_v58  ;;  %v609_v30 = vadd.f32 %v569_v10, %v385_v9 }
 0x119   :  { %v622_v44 = vadd.f32 %v621_v51, %v606_v2  ;;  %v372_v63 = vmax.f32 %v1093_v7, 0.0  ;;  %v386_v5 = vsub.f32 %v370_v19, %v354_v24  ;;  %v356_v38 = vsel %vm1336_vm0, %v1093_v7, 0.0 }
 0x11a   :  { %v587_v39 = vsel %vm1377_vm3, %v584_v60, %v581_v59  ;;  %v593_v22 = vmul.f32 %v1252_v18, %v592_v53  ;;  %v1475_v8 = vmax.f32 %v1038_v27, 0.0  ;;  %vm595_vm4 = vcmp.lt.f32.partialorder %v594_v25, 0.0004427343 }
 0x11b   :  { %v623_v37 = vadd.f32 %v622_v44, %v607_v12  ;;  %v610_v47 = vadd.f32 %v578_v23, %v386_v5  ;;  %v388_v16 = vsub.f32 %v372_v63, %v356_v38 }
 0x11c   :  { %v387_v33 = vsub.f32 %v1475_v8, %v355_v49  ;;  %v596_v32 = vsel %vm595_vm4, %v593_v22, %v590_v61 }
 0x11d   :  { %v624_v46 = vadd.f32 %v623_v37, %v608_v62  ;;  %v612_v57 = vadd.f32 %v596_v32, %v388_v16 }
 0x11e   :  { %v611_v11 = vadd.f32 %v587_v39, %v387_v33 }
 0x11f   :  { %v625_v48 = vadd.f32 %v624_v46, %v609_v30 }
 0x121   :  { %v626_v35 = vadd.f32 %v625_v48, %v610_v47 }
 0x123   :  { %v627_v14 = vadd.f32 %v626_v35, %v611_v11 }
 0x125   :  { %v628_v43 = vadd.f32 %v627_v14, %v612_v57 }
 0x127   :  { %629 = vadd.xlane.f32.xlu0 %v628_v43 }
 0x1b0   :  { %v630_v7 = vpop.xlane.xlu0 %629 }
 0x1b1   :  { %v631_v28 = vrot.slane %v630_v7, 4 }
 0x1b3   :  { %v632_v13 = vadd.f32 %v631_v28, %v630_v7 }
 0x1b5   :  { %v633_v6 = vrot.slane %v632_v13, 2 }
 0x1b7   :  { %v634_v55 = vadd.f32 %v633_v6, %v632_v13 }
 0x1b9   :  { %v635_v18 = vrot.slane %v634_v55, 1 }
 0x1bb   :  { %v636_v41 = vadd.f32 %v635_v18, %v634_v55 }
 0x1bd   :  { %707 = vpush %v636_v41 }
 0x1ee   :  { %s708_s12 = spop %707 }
 0x1ef   :  { %v638_v27 = vstv %s708_s12 }
 0x1f0   :  { %640 = vst [vmem:[#allocation2] sm:$0xff] %v638_v27 }
 0x1f1   :  { %797 = shalt.err (!%p794_p4)
}
 0x1f2   :  { %650 = dma.vmem_to_hbm [thread:$0]  %s648_s11, 128, %s1400_s3, [#allocation3]  }
 0x1f3   :  { %806 = dma.done.wait [#allocation3], 128  }
 0x1f4   :  { %807 = vsyncadd [#allocation3], 4294967168 }
 0x1f5   :  { %654 = vsyncpa [#allocation3], 1 }

</bundles_post_ra>
